<compile_context>
chip_gen: v5e
topology: v5e:2x2
jax: 0.10.0
libtpu: 0.0.40
codegen_flags: <defaults>
</compile_context>

<pallas_src>
import functools

import jax
import jax.numpy as jnp
from jax import lax
from jax.experimental import pallas as pl
from jax.experimental.pallas import tpu as pltpu


def _cdiv(a: int, b: int) -> int:
    return -(-a // b)


# ---------------------------------------------------------------------------
# Kernels
# ---------------------------------------------------------------------------

def _masked_kernel(values_ref, old_values_ref, adv_ref, mask_ref,
                   loss_out_ref, mask_out_ref,
                   loss_acc_ref, mask_acc_ref, *,
                   clip_eps: float, rows: int, tile_rows: int, fold):
    s = pl.program_id(1)

    @pl.when(s == 0)
    def _init():
        loss_acc_ref[...] = jnp.zeros_like(loss_acc_ref)
        mask_acc_ref[...] = jnp.zeros_like(mask_acc_ref)

    v = values_ref[...].astype(jnp.float32)
    ov = old_values_ref[...].astype(jnp.float32)
    adv = adv_ref[...].astype(jnp.float32)
    m = mask_ref[...].astype(jnp.float32)

    # surr1 = (values_clipped - returns)^2 = (clip(v - ov, +/-eps) - adv)^2
    # surr2 = (values         - returns)^2 = ((v - ov)             - adv)^2
    d = v - ov
    c = jnp.clip(d, -clip_eps, clip_eps) - adv
    e = d - adv
    term = jnp.maximum(c * c, e * e)

    if rows % tile_rows != 0:
        # Last block along the row axis is partial: rows >= `rows` hold stale
        # VMEM data and must be selected away (not multiplied — stale data may
        # be NaN/Inf).
        blk = pl.program_id(0) * pl.num_programs(1) + s
        valid = rows - blk * tile_rows
        row_ids = lax.broadcasted_iota(jnp.int32, (tile_rows, term.shape[-1]), 0)
        keep = row_ids < valid
        m = jnp.where(keep, m, 0.0)
        term = jnp.where(keep, term * m, 0.0)
    else:
        term = term * m

    # Fold the tile down to (8, lanes) with pure-VPU vreg adds, then accumulate.
    loss_acc_ref[...] += fold(term)
    mask_acc_ref[...] += fold(m)

    @pl.when(s == pl.num_programs(1) - 1)
    def _finalize():
        loss_out_ref[...] = jnp.reshape(jnp.sum(loss_acc_ref[...]), (1, 1, 1))
        mask_out_ref[...] = jnp.reshape(jnp.sum(mask_acc_ref[...]), (1, 1, 1))


def _unmasked_kernel(values_ref, old_values_ref, adv_ref,
                     loss_out_ref, loss_acc_ref, *,
                     clip_eps: float, rows: int, tile_rows: int, fold):
    s = pl.program_id(1)

    @pl.when(s == 0)
    def _init():
        loss_acc_ref[...] = jnp.zeros_like(loss_acc_ref)

    v = values_ref[...].astype(jnp.float32)
    ov = old_values_ref[...].astype(jnp.float32)
    adv = adv_ref[...].astype(jnp.float32)

    d = v - ov
    c = jnp.clip(d, -clip_eps, clip_eps) - adv
    e = d - adv
    term = jnp.maximum(c * c, e * e)

    if rows % tile_rows != 0:
        blk = pl.program_id(0) * pl.num_programs(1) + s
        valid = rows - blk * tile_rows
        row_ids = lax.broadcasted_iota(jnp.int32, (tile_rows, term.shape[-1]), 0)
        term = jnp.where(row_ids < valid, term, 0.0)

    loss_acc_ref[...] += fold(term)

    @pl.when(s == pl.num_programs(1) - 1)
    def _finalize():
        loss_out_ref[...] = jnp.reshape(jnp.sum(loss_acc_ref[...]), (1, 1, 1))


# ---------------------------------------------------------------------------
# Tiling plan + wrapper
# ---------------------------------------------------------------------------

def _row_alignment(dtypes) -> int:
    """Sublane packing: f32 -> 8 rows/vreg, bf16 -> 16, int8 -> 32."""
    align = 8
    for dt in dtypes:
        itemsize = jnp.dtype(dt).itemsize
        align = max(align, 32 // max(1, min(4, itemsize)))
    return align


def _plan_tiling(n: int, row_align: int, max_block_elems: int):
    """Return (lanes, pad, rows, tile_rows, p_chunks, steps)."""
    # Prefer a lane count that divides n exactly (zero-copy reshape) and gives
    # at least 8 rows; otherwise any exact divisor; otherwise pad to 128 lanes.
    lanes, pad = None, 0
    for cand in (512, 256, 128):
        if n % cand == 0 and n // cand >= 8:
            lanes = cand
            break
    if lanes is None:
        for cand in (512, 256, 128):
            if n % cand == 0:
                lanes = cand
                break
    if lanes is None:
        lanes = 512 if n >= 8 * 512 else 128
        pad = (-n) % lanes
    rows = (n + pad) // lanes

    if rows <= row_align:
        # Tiny input: one full-extent block.
        return lanes, pad, rows, rows, 1, 1

    max_rows = max(row_align, (max_block_elems // lanes) // row_align * row_align)
    if rows >= 4 * row_align:
        # Prefer >= 4 tiles: dual-TensorCore split (v7x) plus >= 2 pipelined
        # steps per chunk.
        max_rows = min(max_rows,
                       max(row_align, _cdiv(_cdiv(rows, 4), row_align) * row_align))
    start = max(row_align, min(max_rows, (rows // row_align) * row_align))

    fallback = None
    tr = start
    while tr >= row_align:
        num_tiles = _cdiv(rows, tr)          # last tile may be partial (masked)
        if num_tiles % 2 == 0:
            return lanes, pad, rows, tr, 2, num_tiles // 2
        if fallback is None:
            fallback = (lanes, pad, rows, tr, 1, num_tiles)
        tr -= row_align
    return fallback


def value_loss(values: jax.Array,
               old_values: jax.Array,
               advantage: jax.Array,
               action_mask: jax.Array | None = None,
               clip_eps: float = 0.2,
               max_block_elems: int | None = None) -> jax.Array:
    """Pallas implementation of coati ValueLoss.forward. Returns an f32 scalar."""
    assert values.shape == old_values.shape == advantage.shape
    if action_mask is not None:
        assert action_mask.shape == values.shape

    n = int(values.size)

    mask = action_mask
    if mask is not None and mask.dtype == jnp.bool_:
        mask = mask.astype(jnp.int8)         # 1 B/elem stream; cast to f32 in-kernel

    stream_dtypes = [values.dtype, old_values.dtype, advantage.dtype]
    if mask is not None:
        stream_dtypes.append(mask.dtype)
    row_align = _row_alignment(stream_dtypes)

    # Generation-aware VMEM budget (v7x: 64 MiB/TC; v5e/v6e: 128 MiB).
    try:
        vmem_phys = int(pltpu.get_tpu_info().vmem_capacity_bytes)
    except Exception:
        vmem_phys = 64 * 1024 * 1024
    vmem_limit = min(vmem_phys * 3 // 4, 96 * 1024 * 1024)

    # Double-buffered input-block bytes per tile element; leave half the budget
    # for compiler temporaries of the element-wise chain.
    per_elem = sum(2 * jnp.dtype(dt).itemsize for dt in stream_dtypes)
    if max_block_elems is None:
        max_block_elems = min(1024 * 1024,
                              max(64 * 1024, (vmem_limit // 2) // per_elem))

    lanes, pad, rows, tile_rows, p_chunks, steps = _plan_tiling(
        n, row_align, int(max_block_elems))

    def to_slab(x):
        x = jnp.reshape(x, (-1,))            # free (contiguous bitcast reshape)
        if pad:
            # Only reached when numel % 128 != 0.
            # TODO(synk): a pad-free ragged-tail path (manual DMA of the trailing
            # <128 elements) would remove this extra copy of the streams.
            x = jnp.pad(x, (0, pad))
        return jnp.reshape(x, (rows, lanes))

    v = to_slab(values)
    ov = to_slab(old_values)
    adv = to_slab(advantage)

    # Small (8, lanes) accumulators; tiles are folded down with VPU adds.
    if tile_rows % 8 == 0 and tile_rows > 8:
        acc_rows = 8
        groups = tile_rows // 8

        def fold(x):
            # Leading-dim split reshape is layout-free; sum over axis 0 is
            # element-wise vreg adds (no XLU).
            return jnp.sum(jnp.reshape(x, (groups, 8, lanes)), axis=0)
    else:
        acc_rows = tile_rows

        def fold(x):
            return x

    in_spec = pl.BlockSpec((tile_rows, lanes), lambda p, s: (p * steps + s, 0))
    out_spec = pl.BlockSpec((1, 1, 1), lambda p, s: (p, 0, 0))
    part_shape = jax.ShapeDtypeStruct((p_chunks, 1, 1), jnp.float32)

    compiler_params = pltpu.CompilerParams(
        dimension_semantics=("parallel", "arbitrary"),
        vmem_limit_bytes=int(vmem_limit),
    )

    static = dict(clip_eps=float(clip_eps), rows=rows, tile_rows=tile_rows,
                  fold=fold)
    stream_bytes = (rows * lanes) * sum(jnp.dtype(dt).itemsize
                                        for dt in stream_dtypes)

    if mask is None:
        # No synthetic ones-mask stream; static denominator = n.
        loss_part = pl.pallas_call(
            functools.partial(_unmasked_kernel, **static),
            out_shape=part_shape,
            grid_spec=pltpu.PrefetchScalarGridSpec(
                num_scalar_prefetch=0,
                grid=(p_chunks, steps),
                in_specs=[in_spec, in_spec, in_spec],
                out_specs=out_spec,
                scratch_shapes=[pltpu.VMEM((acc_rows, lanes), jnp.float32)],
            ),
            compiler_params=compiler_params,
            cost_estimate=pl.CostEstimate(flops=10 * n, transcendentals=0,
                                          bytes_accessed=int(stream_bytes)),
        )(v, ov, adv)
        return 0.5 * jnp.sum(loss_part) / jnp.float32(n)

    m = to_slab(mask)
    loss_part, mask_part = pl.pallas_call(
        functools.partial(_masked_kernel, **static),
        out_shape=(part_shape, part_shape),
        grid_spec=pltpu.PrefetchScalarGridSpec(
            num_scalar_prefetch=0,
            grid=(p_chunks, steps),
            in_specs=[in_spec, in_spec, in_spec, in_spec],
            out_specs=[out_spec, out_spec],
            scratch_shapes=[pltpu.VMEM((acc_rows, lanes), jnp.float32),
                            pltpu.VMEM((acc_rows, lanes), jnp.float32)],
        ),
        compiler_params=compiler_params,
        cost_estimate=pl.CostEstimate(flops=12 * n, transcendentals=0,
                                      bytes_accessed=int(stream_bytes)),
    )(v, ov, adv, m)
    return 0.5 * jnp.sum(loss_part) / jnp.sum(mask_part)


# ---------------------------------------------------------------------------
# Reference + self-test
# ---------------------------------------------------------------------------

def value_loss_ref(values, old_values, advantage, action_mask, clip_eps=0.2):
    """Pure-JAX reference (mirrors the PyTorch forward)."""
    values = values.astype(jnp.float32)
    old_values = old_values.astype(jnp.float32)
    advantage = advantage.astype(jnp.float32)
    action_mask = action_mask.astype(jnp.float32)
    returns = advantage + old_values
    values_clipped = old_values + jnp.clip(values - old_values, -clip_eps, clip_eps)
    surr1 = (values_clipped - returns) ** 2
    surr2 = (values - returns) ** 2
    loss = jnp.maximum(surr1, surr2) / jnp.sum(action_mask)
    return 0.5 * jnp.sum(loss * action_mask)


if __name__ == "__main__":
    key = jax.random.PRNGKey(0)
    ks = jax.random.split(key, 12)

    # Case 1: small PPO-like (B, S), f32 mask; single full-extent block.
    B, S = 2, 256
    v1 = jax.random.normal(ks[0], (B, S), jnp.float32)
    o1 = jax.random.normal(ks[1], (B, S), jnp.float32)
    a1 = jax.random.normal(ks[2], (B, S), jnp.float32)
    m1 = (jax.random.uniform(ks[3], (B, S)) > 0.3).astype(jnp.float32)
    out1 = jax.block_until_ready(value_loss(v1, o1, a1, m1))
    exp1 = value_loss_ref(v1, o1, a1, m1)
    assert jnp.allclose(out1, exp1, rtol=1e-4, atol=1e-5), (out1, exp1)

    # Case 2: bool mask (int8 stream), 2-way "parallel" grid with a ragged
    # last block (in-kernel row masking) and (8, lanes) accumulator folding.
    B, S = 5, 1664
    v2 = jax.random.normal(ks[4], (B, S), jnp.float32)
    o2 = jax.random.normal(ks[5], (B, S), jnp.float32)
    a2 = jax.random.normal(ks[6], (B, S), jnp.float32)
    m2 = jax.random.uniform(ks[7], (B, S)) > 0.3
    out2 = jax.block_until_ready(
        value_loss(v2, o2, a2, m2, max_block_elems=64 * 128))
    exp2 = value_loss_ref(v2, o2, a2, m2.astype(jnp.float32))
    assert jnp.allclose(out2, exp2, rtol=1e-4, atol=1e-4), (out2, exp2)

    # Case 3: action_mask=None (no mask stream, static denominator),
    # multi-step grid with a ragged tail handled in-kernel (no padding).
    B, S = 7, 768
    v3 = jax.random.normal(ks[8], (B, S), jnp.float32)
    o3 = jax.random.normal(ks[9], (B, S), jnp.float32)
    a3 = jax.random.normal(ks[10], (B, S), jnp.float32)
    out3 = jax.block_until_ready(
        value_loss(v3, o3, a3, None, max_block_elems=4 * 256))
    exp3 = value_loss_ref(v3, o3, a3, jnp.ones((B, S), jnp.float32))
    assert jnp.allclose(out3, exp3, rtol=1e-4, atol=1e-4), (out3, exp3)

    # Case 4: element count not divisible by 128 -> padded fallback path.
    B, S = 2, 100
    v4 = jax.random.normal(ks[11], (B, S), jnp.float32)
    o4 = jax.random.normal(ks[0], (B, S), jnp.float32)
    a4 = jax.random.normal(ks[1], (B, S), jnp.float32)
    m4 = (jax.random.uniform(ks[2], (B, S)) > 0.5).astype(jnp.float32)
    out4 = jax.block_until_ready(value_loss(v4, o4, a4, m4))
    exp4 = value_loss_ref(v4, o4, a4, m4)
    assert jnp.allclose(out4, exp4, rtol=1e-4, atol=1e-5), (out4, exp4)

    print("KERNEL_OK")
</pallas_src>

<mosaic_0001>
module attributes {stable_mosaic.version = 11 : i64} {
  func.func @_masked_kernel(%arg0: i32, %arg1: i32, %arg2: memref<1x512xf32, #tpu.memory_space<vmem>>, %arg3: memref<1x512xf32, #tpu.memory_space<vmem>>, %arg4: memref<1x512xf32, #tpu.memory_space<vmem>>, %arg5: memref<1x512xf32, #tpu.memory_space<vmem>>, %arg6: memref<1x1x1xf32, #tpu.memory_space<vmem>>, %arg7: memref<1x1x1xf32, #tpu.memory_space<vmem>>, %arg8: memref<1x512xf32, #tpu.memory_space<vmem>>, %arg9: memref<1x512xf32, #tpu.memory_space<vmem>>) attributes {dimension_semantics = [#tpu.dimension_semantics<parallel>, #tpu.dimension_semantics<arbitrary>], iteration_bounds = array<i64: 1, 1>, scalar_prefetch = 0 : i64, scratch_operands = 2 : i64, tpu.core_type = #tpu.core_type<tc>, window_params = [{transform_indices = @transform_0, window_bounds = array<i64: 1, 512>}, {transform_indices = @transform_1, window_bounds = array<i64: 1, 512>}, {transform_indices = @transform_2, window_bounds = array<i64: 1, 512>}, {transform_indices = @transform_3, window_bounds = array<i64: 1, 512>}, {transform_indices = @transform_4, window_bounds = array<i64: 1, 1, 1>}, {transform_indices = @transform_5, window_bounds = array<i64: 1, 1, 1>}]} {
    %c0_i32 = arith.constant 0 : i32
    %0 = arith.cmpi eq, %arg1, %c0_i32 : i32
    %1 = arith.extui %0 : i1 to i32
    %c0_i32_0 = arith.constant 0 : i32
    %2 = arith.cmpi ne, %1, %c0_i32_0 : i32
    scf.if %2 {
      %cst_19 = arith.constant 0.000000e+00 : f32
      %27 = vector.broadcast %cst_19 : f32 to vector<1x512xf32>
      %c0_20 = arith.constant 0 : index
      %c0_21 = arith.constant 0 : index
      %28 = vector.load %arg8[%c0_20, %c0_21] : memref<1x512xf32, #tpu.memory_space<vmem>>, vector<1x512xf32>
      tpu.vector_store %arg8[%c0_20, %c0_21], %27 {strides = array<i32>} : memref<1x512xf32, #tpu.memory_space<vmem>>, vector<1x512xf32>,
      %cst_22 = arith.constant 0.000000e+00 : f32
      %29 = vector.broadcast %cst_22 : f32 to vector<1x512xf32>
      %c0_23 = arith.constant 0 : index
      %c0_24 = arith.constant 0 : index
      %30 = vector.load %arg9[%c0_23, %c0_24] : memref<1x512xf32, #tpu.memory_space<vmem>>, vector<1x512xf32>
      tpu.vector_store %arg9[%c0_23, %c0_24], %29 {strides = array<i32>} : memref<1x512xf32, #tpu.memory_space<vmem>>, vector<1x512xf32>,
    } else {
    }
    %c0 = arith.constant 0 : index
    %c0_1 = arith.constant 0 : index
    %3 = vector.load %arg2[%c0, %c0_1] : memref<1x512xf32, #tpu.memory_space<vmem>>, vector<1x512xf32>
    %c0_2 = arith.constant 0 : index
    %c0_3 = arith.constant 0 : index
    %4 = vector.load %arg3[%c0_2, %c0_3] : memref<1x512xf32, #tpu.memory_space<vmem>>, vector<1x512xf32>
    %c0_4 = arith.constant 0 : index
    %c0_5 = arith.constant 0 : index
    %5 = vector.load %arg4[%c0_4, %c0_5] : memref<1x512xf32, #tpu.memory_space<vmem>>, vector<1x512xf32>
    %c0_6 = arith.constant 0 : index
    %c0_7 = arith.constant 0 : index
    %6 = vector.load %arg5[%c0_6, %c0_7] : memref<1x512xf32, #tpu.memory_space<vmem>>, vector<1x512xf32>
    %7 = arith.subf %3, %4 : vector<1x512xf32>
    %cst = arith.constant -2.000000e-01 : f32
    %cst_8 = arith.constant 2.000000e-01 : f32
    %8 = vector.broadcast %cst : f32 to vector<1x512xf32>
    %9 = arith.maximumf %8, %7 : vector<1x512xf32>
    %10 = vector.broadcast %cst_8 : f32 to vector<1x512xf32>
    %11 = arith.minimumf %10, %9 : vector<1x512xf32>
    %12 = arith.subf %11, %5 : vector<1x512xf32>
    %13 = arith.subf %7, %5 : vector<1x512xf32>
    %14 = arith.mulf %12, %12 : vector<1x512xf32>
    %15 = arith.mulf %13, %13 : vector<1x512xf32>
    %16 = arith.maximumf %14, %15 : vector<1x512xf32>
    %17 = arith.mulf %16, %6 : vector<1x512xf32>
    %c0_9 = arith.constant 0 : index
    %c0_10 = arith.constant 0 : index
    %18 = vector.load %arg8[%c0_9, %c0_10] : memref<1x512xf32, #tpu.memory_space<vmem>>, vector<1x512xf32>
    %19 = arith.addf %18, %17 : vector<1x512xf32>
    %c0_11 = arith.constant 0 : index
    %c0_12 = arith.constant 0 : index
    %20 = vector.load %arg8[%c0_11, %c0_12] : memref<1x512xf32, #tpu.memory_space<vmem>>, vector<1x512xf32>
    tpu.vector_store %arg8[%c0_11, %c0_12], %19 {strides = array<i32>} : memref<1x512xf32, #tpu.memory_space<vmem>>, vector<1x512xf32>,
    %c0_13 = arith.constant 0 : index
    %c0_14 = arith.constant 0 : index
    %21 = vector.load %arg9[%c0_13, %c0_14] : memref<1x512xf32, #tpu.memory_space<vmem>>, vector<1x512xf32>
    %22 = arith.addf %21, %6 : vector<1x512xf32>
    %c0_15 = arith.constant 0 : index
    %c0_16 = arith.constant 0 : index
    %23 = vector.load %arg9[%c0_15, %c0_16] : memref<1x512xf32, #tpu.memory_space<vmem>>, vector<1x512xf32>
    tpu.vector_store %arg9[%c0_15, %c0_16], %22 {strides = array<i32>} : memref<1x512xf32, #tpu.memory_space<vmem>>, vector<1x512xf32>,
    %c0_i32_17 = arith.constant 0 : i32
    %24 = arith.cmpi eq, %arg1, %c0_i32_17 : i32
    %25 = arith.extui %24 : i1 to i32
    %c0_i32_18 = arith.constant 0 : i32
    %26 = arith.cmpi ne, %25, %c0_i32_18 : i32
    scf.if %26 {
      %c0_19 = arith.constant 0 : index
      %c0_20 = arith.constant 0 : index
      %27 = vector.load %arg8[%c0_19, %c0_20] : memref<1x512xf32, #tpu.memory_space<vmem>>, vector<1x512xf32>
      %28 = vector.shape_cast %27 : vector<1x512xf32> to vector<1x1x512xf32>
      %cst_21 = arith.constant dense<0.000000e+00> : vector<1xf32>
      %29 = vector.multi_reduction <add>, %28, %cst_21 [1, 2] : vector<1x1x512xf32> to vector<1xf32>
      %30 = vector.shape_cast %29 : vector<1xf32> to vector<1x1x1xf32>
      %31 = vector.extract %30[0, 0, 0] : f32 from vector<1x1x1xf32>
      %32 = vector.broadcast %31 : f32 to vector<1x1x1xf32>
      %c0_22 = arith.constant 0 : index
      %c0_23 = arith.constant 0 : index
      %c0_24 = arith.constant 0 : index
      %33 = vector.load %arg6[%c0_22, %c0_23, %c0_24] : memref<1x1x1xf32, #tpu.memory_space<vmem>>, vector<1x1x1xf32>
      tpu.vector_store %arg6[%c0_22, %c0_23, %c0_24], %32 {strides = array<i32>} : memref<1x1x1xf32, #tpu.memory_space<vmem>>, vector<1x1x1xf32>,
      %c0_25 = arith.constant 0 : index
      %c0_26 = arith.constant 0 : index
      %34 = vector.load %arg9[%c0_25, %c0_26] : memref<1x512xf32, #tpu.memory_space<vmem>>, vector<1x512xf32>
      %35 = vector.shape_cast %34 : vector<1x512xf32> to vector<1x1x512xf32>
      %cst_27 = arith.constant dense<0.000000e+00> : vector<1xf32>
      %36 = vector.multi_reduction <add>, %35, %cst_27 [1, 2] : vector<1x1x512xf32> to vector<1xf32>
      %37 = vector.shape_cast %36 : vector<1xf32> to vector<1x1x1xf32>
      %38 = vector.extract %37[0, 0, 0] : f32 from vector<1x1x1xf32>
      %39 = vector.broadcast %38 : f32 to vector<1x1x1xf32>
      %c0_28 = arith.constant 0 : index
      %c0_29 = arith.constant 0 : index
      %c0_30 = arith.constant 0 : index
      %40 = vector.load %arg7[%c0_28, %c0_29, %c0_30] : memref<1x1x1xf32, #tpu.memory_space<vmem>>, vector<1x1x1xf32>
      tpu.vector_store %arg7[%c0_28, %c0_29, %c0_30], %39 {strides = array<i32>} : memref<1x1x1xf32, #tpu.memory_space<vmem>>, vector<1x1x1xf32>,
    } else {
    }
    return
  }
  func.func @transform_0(%arg0: i32, %arg1: i32) -> (i32, i32) {
    %c1_i32 = arith.constant 1 : i32
    %0 = arith.muli %arg0, %c1_i32 : i32
    %1 = arith.addi %0, %arg1 : i32
    %c0_i32 = arith.constant 0 : i32
    %c0_i32_0 = arith.constant 0 : i32
    return %1, %c0_i32 : i32, i32
  }
  func.func @transform_1(%arg0: i32, %arg1: i32) -> (i32, i32) {
    %c1_i32 = arith.constant 1 : i32
    %0 = arith.muli %arg0, %c1_i32 : i32
    %1 = arith.addi %0, %arg1 : i32
    %c0_i32 = arith.constant 0 : i32
    %c0_i32_0 = arith.constant 0 : i32
    return %1, %c0_i32 : i32, i32
  }
  func.func @transform_2(%arg0: i32, %arg1: i32) -> (i32, i32) {
    %c1_i32 = arith.constant 1 : i32
    %0 = arith.muli %arg0, %c1_i32 : i32
    %1 = arith.addi %0, %arg1 : i32
    %c0_i32 = arith.constant 0 : i32
    %c0_i32_0 = arith.constant 0 : i32
    return %1, %c0_i32 : i32, i32
  }
  func.func @transform_3(%arg0: i32, %arg1: i32) -> (i32, i32) {
    %c1_i32 = arith.constant 1 : i32
    %0 = arith.muli %arg0, %c1_i32 : i32
    %1 = arith.addi %0, %arg1 : i32
    %c0_i32 = arith.constant 0 : i32
    %c0_i32_0 = arith.constant 0 : i32
    return %1, %c0_i32 : i32, i32
  }
  func.func @transform_4(%arg0: i32, %arg1: i32) -> (i32, i32, i32) {
    %c0_i32 = arith.constant 0 : i32
    %c0_i32_0 = arith.constant 0 : i32
    %c0_i32_1 = arith.constant 0 : i32
    return %arg0, %c0_i32, %c0_i32_0 : i32, i32, i32
  }
  func.func @transform_5(%arg0: i32, %arg1: i32) -> (i32, i32, i32) {
    %c0_i32 = arith.constant 0 : i32
    %c0_i32_0 = arith.constant 0 : i32
    %c0_i32_1 = arith.constant 0 : i32
    return %arg0, %c0_i32, %c0_i32_0 : i32, i32, i32
  }
}

</mosaic_0001>

<bundles_post_ra>
// kernel: tpu_custom_call.1
= control target key start
LH: loop header
LB: loop body
LE: loop exit
PB: predicated region body
PF: predicated region fallthrough
CT: control target
= control target key end

     0   :  { %11 = vsyncpa [#allocation5], 0  ;;  %s462_s0 = inlined_call_operand.hbm [shape: f32[1,512], index: 0, kind: input, shape index: {}]   ;;  %s463_s1 = inlined_call_operand.hbm [shape: f32[1,512], index: 1, kind: input, shape index: {}]   ;;  %s464_s2 = inlined_call_operand.hbm [shape: f32[1,512], index: 2, kind: input, shape index: {}]   ;;  %s465_s3 = inlined_call_operand.hbm [shape: f32[1,512], index: 3, kind: input, shape index: {}]   ;;  %s466_s4 = inlined_call_operand.hbm [shape: f32[1,1,1], index: 4, kind: output, shape index: {0}]   ;;  %s467_s5 = inlined_call_operand.hbm [shape: f32[1,1,1], index: 5, kind: output, shape index: {1}]  }
   0x1   :  { %12 = vsyncpa [#allocation8], 0 }
   0x2   :  { %13 = vsyncpa [#allocation11], 0 }
   0x3   :  { %14 = vsyncpa [#allocation6], 0  ;;  %s38_s20 = sshll.u32 %s463_s1, 4  ;;  %s39_s20 = int_to_ptr.hbm [resolvable:$true] %s38_s20 }
   0x4   :  { %15 = vsyncpa [#allocation14], 0  ;;  %s387_s21 = smov [#allocation7]   ;;  %s24_s25 = sshll.u32 %s462_s0, 4  ;;  %s25_s25 = int_to_ptr.hbm [resolvable:$true] %s24_s25 }
   0x5   :  { %s40_s22 = sshll.u32 %s387_s21, 4  ;;  %s388_s26 = smov [#allocation4]   ;;  %s41_s22 = int_to_ptr.vmem [resolvable:$true] %s40_s22 }
   0x6   :  { %43 = dma.hbm_to_vmem [thread:$0]  %s39_s20, 64, %s41_s22, [#allocation8]  }
   0x7   :  { %s26_s27 = sshll.u32 %s388_s26, 4  ;;  %s52_s30 = sshll.u32 %s464_s2, 4  ;;  %s27_s27 = int_to_ptr.vmem [resolvable:$true] %s26_s27  ;;  %s53_s30 = int_to_ptr.hbm [resolvable:$true] %s52_s30 }
   0x8   :  { %29 = dma.hbm_to_vmem [thread:$0]  %s25_s25, 64, %s27_s27, [#allocation5]  }
   0x9   :  { %s66_s7 = sshll.u32 %s465_s3, 4  ;;  %s389_s8 = smov [#allocation9]   ;;  %s67_s7 = int_to_ptr.hbm [resolvable:$true] %s66_s7 }
   0xa   :  { %s54_s9 = sshll.u32 %s389_s8, 4  ;;  %s390_s0 = smov [#allocation10]   ;;  %s55_s9 = int_to_ptr.vmem [resolvable:$true] %s54_s9 }
   0xb   :  { %57 = dma.hbm_to_vmem [thread:$0]  %s53_s30, 64, %s55_s9, [#allocation8]  }
   0xc   :  { %s68_s10 = sshll.u32 %s390_s0, 4  ;;  %s69_s10 = int_to_ptr.vmem [resolvable:$true] %s68_s10 }
   0xd   :  { %71 = dma.hbm_to_vmem [thread:$0]  %s67_s7, 64, %s69_s10, [#allocation11]  }
   0xe   :  { %377 = dma.done.wait [#allocation5], 64  }
   0xf   :  { %378 = vsyncadd [#allocation5], 4294967232 }
  0x10   :  { %379 = dma.done.wait [#allocation8], 128  }
  0x11   :  { %380 = vsyncadd [#allocation8], 4294967168 }
  0x12   :  { %381 = dma.done.wait [#allocation11], 64  }
  0x13   :  { %382 = vsyncadd [#allocation11], 4294967232  ;;  %v96_v0 = vlaneseq  ;;  %v391_v2 = vmov 0.0   ;;  %v102_v3 = vld [vmem:[#allocation4] sm:$0xf]  ;;  %vm138_vm1 = vcmask 1040384  }
  0x14   :  { %v103_v4 = vld [vmem:[#allocation7] sm:$0xf]  ;;  %v104_v5 = vld [vmem:[#allocation9] sm:$0xf]  ;;  %v105_v9 = vld [vmem:[#allocation10] sm:$0xf] }
  0x15   :  { %vm436_vm0 = vcmp.lt.s32.totalorder %v96_v0, 512  ;;  %v106_v6 = vsub.f32 %v102_v3, %v103_v4  ;;  %s392_s2 = smov [#allocation12]   ;;  %s193_s13 = sshll.u32 %s466_s4, 4  ;;  %vm156_vm2 = vcmask 0   ;;  %s194_s13 = int_to_ptr.hbm [resolvable:$true] %s193_s13 }
  0x16   :  { %100 = vst.msk [vmem:[#allocation2] sm:$0xf] %vm436_vm0, %v391_v2  ;;  %s191_s3 = sshll.u32 %s392_s2, 4  ;;  %s393_s15 = smov [#allocation13]   ;;  %s192_s3 = int_to_ptr.vmem [resolvable:$true] %s191_s3 }
  0x17   :  { %101 = vst.msk [vmem:[#allocation3] sm:$0xf] %vm436_vm0, %v391_v2  ;;  %v221_v7 = vclamps-f32 %v106_v6, 0.2  ;;  %v110_v8 = vsub.f32 %v106_v6, %v104_v5  ;;  %s202_s16 = sshll.u32 %s393_s15, 4  ;;  %s204_s19 = sshll.u32 %s467_s5, 4  ;;  %s203_s16 = int_to_ptr.vmem [resolvable:$true] %s202_s16  ;;  %s205_s19 = int_to_ptr.hbm [resolvable:$true] %s204_s19 }
  0x19   :  { %v109_v11 = vsub.f32 %v221_v7, %v104_v5  ;;  %v112_v12 = vmul.f32 %v110_v8, %v110_v8 }
  0x1b   :  { %v111_v14 = vmul.f32 %v109_v11, %v109_v11 }
  0x1d   :  { %v113_v15 = vmax.f32 %v111_v14, %v112_v12  ;;  %v115_v16 = vld [vmem:[#allocation2] sm:$0xf] }
  0x1e   :  { %v122_v10 = vld [vmem:[#allocation3] sm:$0xf] }
  0x1f   :  { %v123_v13 = vadd.f32 %v122_v10, %v105_v9  ;;  %v114_v17 = vmul.f32 %v113_v15, %v105_v9 }
  0x21   :  { %124 = vst.msk [vmem:[#allocation3] sm:$0xf] %vm436_vm0, %v123_v13  ;;  %v116_v18 = vadd.f32 %v115_v16, %v114_v17 }
  0x23   :  { %121 = vst.msk [vmem:[#allocation2] sm:$0xf] %vm436_vm0, %v116_v18 }
  0x28   :  { %v158_v19 = vld [vmem:[#allocation3] sm:$0xf] }
  0x29   :  { %v160_v20 = vperm.slane %v158_v19, 0  ;;  %v161_v21 = vperm.slane %v158_v19, 1  ;;  %v162_v27 = vperm.slane %v158_v19, 2  ;;  %v163_v37 = vperm.slane %v158_v19, 3 }
  0x2a   :  { %v128_v22 = vld [vmem:[#allocation2] sm:$0xf] }
  0x2b   :  { %v130_v23 = vperm.slane %v128_v22, 0  ;;  %v131_v24 = vperm.slane %v128_v22, 1  ;;  %v132_v25 = vperm.slane %v128_v22, 2  ;;  %v133_v26 = vperm.slane %v128_v22, 3 }
  0x2c   :  { %v168_v28 = vsel %vm138_vm1, %v160_v20, 0.0  ;;  %v169_v32 = vsel %vm138_vm1, %v161_v21, 0.0  ;;  %v171_v38 = vsel %vm138_vm1, %v162_v27, 0.0  ;;  %v173_v41 = vsel %vm138_vm1, %v163_v37, 0.0 }
  0x2d   :  { %v139_v29 = vsel %vm138_vm1, %v130_v23, 0.0  ;;  %v140_v30 = vsel %vm138_vm1, %v131_v24, 0.0  ;;  %v142_v31 = vsel %vm138_vm1, %v132_v25, 0.0  ;;  %v144_v34 = vsel %vm138_vm1, %v133_v26, 0.0 }
  0x2e   :  { %v141_v33 = vadd.f32 %v140_v30, %v139_v29  ;;  %v170_v36 = vadd.f32 %v169_v32, %v168_v28 }
  0x30   :  { %v143_v35 = vadd.f32 %v142_v31, %v141_v33  ;;  %v172_v40 = vadd.f32 %v171_v38, %v170_v36 }
  0x32   :  { %v145_v39 = vadd.f32 %v144_v34, %v143_v35  ;;  %v174_v42 = vadd.f32 %v173_v41, %v172_v40 }
  0x34   :  { %146 = vadd.xlane.f32.xlu0 %v145_v39 }
  0x3c   :  { %175 = vadd.xlane.f32.xlu0 %v174_v42 }
  0xa7   :  { %v147_v43 = vpop.xlane.xlu0 %146 }
  0xa8   :  { %v148_v44 = vrot.slane %v147_v43, 4 }
  0xaa   :  { %v149_v45 = vadd.f32 %v148_v44, %v147_v43 }
  0xac   :  { %v150_v46 = vrot.slane %v149_v45, 2 }
  0xae   :  { %v151_v47 = vadd.f32 %v150_v46, %v149_v45 }
  0xaf   :  { %v176_v48 = vpop.xlane.xlu0 %175 }
  0xb0   :  { %v177_v49 = vrot.slane %v176_v48, 4  ;;  %v152_v50 = vrot.slane %v151_v47, 1 }
  0xb2   :  { %v178_v51 = vadd.f32 %v177_v49, %v176_v48  ;;  %v153_v52 = vadd.f32 %v152_v50, %v151_v47 }
  0xb4   :  { %v179_v53 = vrot.slane %v178_v51, 2  ;;  %222 = vpush %v153_v52 }
  0xb6   :  { %v180_v54 = vadd.f32 %v179_v53, %v178_v51 }
  0xb8   :  { %v181_v55 = vrot.slane %v180_v54, 1 }
  0xba   :  { %v182_v56 = vadd.f32 %v181_v55, %v180_v54 }
  0xbc   :  { %224 = vpush %v182_v56 }
  0xe5   :  { %s223_s14 = spop %222 }
  0xe6   :  { %v155_v57 = vstv %s223_s14 }
  0xe7   :  { %157 = vst.msk [vmem:[#allocation12] sm:$0x1] %vm156_vm2, %v155_v57 }
  0xe8   :  { %196 = dma.vmem_to_hbm [thread:$0]  %s192_s3, 16, %s194_s13, [#allocation6]  }
  0xed   :  { %s225_s20 = spop %224 }
  0xee   :  { %v184_v58 = vstv %s225_s20 }
  0xef   :  { %185 = vst.msk [vmem:[#allocation13] sm:$0x1] %vm156_vm2, %v184_v58 }
  0xf0   :  { %207 = dma.vmem_to_hbm [thread:$0]  %s203_s16, 16, %s205_s19, [#allocation14]  }
  0xf1   :  { %383 = dma.done.wait [#allocation6], 16  }
  0xf2   :  { %384 = vsyncadd [#allocation6], 4294967280 }
  0xf3   :  { %385 = dma.done.wait [#allocation14], 16  }
  0xf4   :  { %386 = vsyncadd [#allocation14], 4294967280 }
  0xf5   :  { %216 = vsyncpa [#allocation5], 1 }
  0xf6   :  { %217 = vsyncpa [#allocation8], 1 }
  0xf7   :  { %218 = vsyncpa [#allocation11], 1 }
  0xf8   :  { %219 = vsyncpa [#allocation6], 1 }
  0xf9   :  { %220 = vsyncpa [#allocation14], 1 }

</bundles_post_ra>
